<compile_context>
chip_gen: v5e
topology: v5e:2x2
jax: 0.10.0
libtpu: 0.0.40
codegen_flags: <defaults>
</compile_context>

<pallas_src>
import math
import jax
import jax.numpy as jnp
from jax.experimental import pallas as pl
from jax.experimental.pallas import tpu as pltpu

HIDDEN = 32
_VMEM_LIMIT_BYTES = 32 * 1024 * 1024   # safe on v5e (128 MiB), v6e (128), v7x (64)


# -----------------------------------------------------------------------------
# Kernels
# -----------------------------------------------------------------------------
def net_kernel(x_ref, temb_ref, w1t_ref, b1t_ref, w2t_ref, b2t_ref, o_ref):
    # x_ref: (C, TILE_P)  temb/b1t: (HIDDEN, 1)  w1t: (HIDDEN, C)  w2t: (C, HIDDEN)
    h = jnp.dot(w1t_ref[...], x_ref[...], preferred_element_type=jnp.float32)
    h = h + b1t_ref[...] + temb_ref[...]          # lane-broadcast of (HIDDEN,1)
    h = h * jax.nn.sigmoid(h)                     # SiLU on VPU/EUP
    o_ref[...] = (jnp.dot(w2t_ref[...], h, preferred_element_type=jnp.float32)
                  + b2t_ref[...])


def p_sample_fused_kernel(x_ref, noise_ref, temb_ref,
                          w1t_ref, b1t_ref, w2t_ref, b2t_ref,
                          sra_ref, coef_ref, spv_ref, o_ref):
    # --- eps = net(x, t), stays resident in VMEM ---
    b = pl.program_id(0)
    h = jnp.dot(w1t_ref[...], x_ref[...], preferred_element_type=jnp.float32)
    h = h + b1t_ref[...] + temb_ref[...]
    h = h * jax.nn.sigmoid(h)
    eps = (jnp.dot(w2t_ref[...], h, preferred_element_type=jnp.float32)
           + b2t_ref[...])
    # --- fused posterior-sampling epilogue (pure FMA; scalars hoisted) ---
    #   mean = sra * (x - betas * eps / somac) = sra*x - coef*eps
    #   out  = mean + sqrt(pv) * noise        (sqrt(pv) forced to 0 at t_index==0)
    o_ref[...] = (sra_ref[b] * x_ref[...] - coef_ref[b] * eps
                  + spv_ref[b] * noise_ref[...])


def q_sample_kernel(x_ref, noise_ref, sac_ref, somac_ref, o_ref):
    # x/noise/o: (B, ROW_TILE, 128);  sac/somac: (B, 1, 1) broadcast columns
    o_ref[...] = sac_ref[...] * x_ref[...] + somac_ref[...] * noise_ref[...]


# -----------------------------------------------------------------------------
# Tiling helpers
# -----------------------------------------------------------------------------
def _pixel_tile(P, max_tile=2048):
    """Largest pixel tile (lane axis) that keeps VMEM bounded."""
    if P <= max_tile:
        return P                              # full-dim block is always legal
    for cand in range(max_tile, 127, -128):   # multiple of 128, divides P
        if P % cand == 0:
            return cand
    return P


def _row_tile(rows, batch, max_rows_per_step=4096):
    """Row tile for the (B, rows, 128) elementwise kernels (B folded in)."""
    cap = max(8, max_rows_per_step // max(batch, 1))
    if rows <= cap:
        return rows
    start = cap - (cap % 8)
    for cand in range(start, 7, -8):          # multiple of 8, divides rows
        if rows % cand == 0:
            return cand
    return rows


def time_embedding(t, dim):
    # sinusoidal embedding (plain-JAX glue, tiny)
    half = dim // 2
    freqs = jnp.exp(-math.log(10000.0) * jnp.arange(half, dtype=jnp.float32) / half)
    args = t.astype(jnp.float32)[:, None] * freqs[None, :]
    return jnp.concatenate([jnp.sin(args), jnp.cos(args)], axis=-1)   # (B, dim)


# -----------------------------------------------------------------------------
# Model wrapper
# -----------------------------------------------------------------------------
class DiffusionModel:
    def __init__(self, net_params, betas, shape, timesteps):
        w1, b1, w2, b2 = net_params              # (C,H), (1,H), (H,C), (1,C)
        # pre-transposed weights for the channel-major kernels
        self.w1t = jnp.asarray(w1).T              # (HIDDEN, C)
        self.b1t = jnp.asarray(b1).T              # (HIDDEN, 1)
        self.w2t = jnp.asarray(w2).T              # (C, HIDDEN)
        self.b2t = jnp.asarray(b2).T              # (C, 1)

        self.betas = betas
        self.alphas = 1.0 - betas
        self.alphas_cumprod = jnp.cumprod(self.alphas)
        self.alphas_cumprod_prev = jnp.pad(self.alphas_cumprod[:-1], (1, 0),
                                           constant_values=1.0)
        self.sqrt_recip_alphas = jnp.sqrt(1.0 / self.alphas)
        self.sqrt_alphas_cumprod = jnp.sqrt(self.alphas_cumprod)
        self.sqrt_one_minus_alphas_cumprod = jnp.sqrt(1.0 - self.alphas_cumprod)
        self.posterior_variance = (betas * (1.0 - self.alphas_cumprod_prev)
                                   / (1.0 - self.alphas_cumprod))
        self.shape = shape
        self.timesteps = timesteps

    # ----------------------- forward == net(x, t) ---------------------------
    def forward(self, x, t):
        B, C, H, W = x.shape
        P = H * W
        tp = _pixel_tile(P)
        x2d = x.reshape(B, C, P)                           # NCHW, no transpose
        temb = time_embedding(t, HIDDEN).reshape(B, HIDDEN, 1)

        out = pl.pallas_call(
            net_kernel,
            out_shape=jax.ShapeDtypeStruct((B, C, P), jnp.float32),
            grid=(B, P // tp),
            in_specs=[
                pl.BlockSpec((None, C, tp), lambda b, p: (b, 0, p)),
                pl.BlockSpec((None, HIDDEN, 1), lambda b, p: (b, 0, 0)),
                pl.BlockSpec((HIDDEN, C), lambda b, p: (0, 0)),
                pl.BlockSpec((HIDDEN, 1), lambda b, p: (0, 0)),
                pl.BlockSpec((C, HIDDEN), lambda b, p: (0, 0)),
                pl.BlockSpec((C, 1), lambda b, p: (0, 0)),
            ],
            out_specs=pl.BlockSpec((None, C, tp), lambda b, p: (b, 0, p)),
            compiler_params=pltpu.CompilerParams(
                dimension_semantics=("parallel", "parallel"),
                vmem_limit_bytes=_VMEM_LIMIT_BYTES),
        )(x2d, temb, self.w1t, self.b1t, self.w2t, self.b2t)
        return out.reshape(B, C, H, W)

    # ------------------------------ q_sample --------------------------------
    def q_sample(self, x_start, t, noise):
        B = x_start.shape[0]
        N = x_start.size // B
        assert N % 128 == 0
        rows = N // 128
        rt = _row_tile(rows, B)
        xf = x_start.reshape(B, rows, 128)
        nf = noise.reshape(B, rows, 128)
        sac_t = self.sqrt_alphas_cumprod[t].reshape(B, 1, 1)
        somac_t = self.sqrt_one_minus_alphas_cumprod[t].reshape(B, 1, 1)

        out = pl.pallas_call(
            q_sample_kernel,
            out_shape=jax.ShapeDtypeStruct((B, rows, 128), jnp.float32),
            grid=(rows // rt,),
            in_specs=[
                pl.BlockSpec((B, rt, 128), lambda r: (0, r, 0)),
                pl.BlockSpec((B, rt, 128), lambda r: (0, r, 0)),
                pl.BlockSpec((B, 1, 1), lambda r: (0, 0, 0)),
                pl.BlockSpec((B, 1, 1), lambda r: (0, 0, 0)),
            ],
            out_specs=pl.BlockSpec((B, rt, 128), lambda r: (0, r, 0)),
            compiler_params=pltpu.CompilerParams(
                dimension_semantics=("parallel",),
                vmem_limit_bytes=_VMEM_LIMIT_BYTES),
        )(xf, nf, sac_t, somac_t)
        return out.reshape(x_start.shape)

    def get_noisy_image(self, x_start, t, noise):
        return self.q_sample(x_start, t, noise)

    # -------------------- p_sample (net + epilogue, fused) ------------------
    def p_sample(self, x, t, t_index, noise):
        B, C, H, W = x.shape
        P = H * W
        tp = _pixel_tile(P)
        x2d = x.reshape(B, C, P)
        n2d = noise.reshape(B, C, P)
        temb = time_embedding(t, HIDDEN).reshape(B, HIDDEN, 1)

        # hoisted per-batch scalars (SMEM)
        betas_t = self.betas[t]
        somac_t = self.sqrt_one_minus_alphas_cumprod[t]
        sra_t = self.sqrt_recip_alphas[t]
        coef_t = sra_t * betas_t / somac_t
        # t_index == 0 -> return the mean exactly; jnp.where works for both a
        # static Python int and a traced scalar (no Python branching on tracers).
        spv_t = jnp.where(jnp.asarray(t_index) == 0,
                          jnp.zeros_like(betas_t),
                          jnp.sqrt(self.posterior_variance[t]))

        out = pl.pallas_call(
            p_sample_fused_kernel,
            out_shape=jax.ShapeDtypeStruct((B, C, P), jnp.float32),
            grid=(B, P // tp),
            in_specs=[
                pl.BlockSpec((None, C, tp), lambda b, p: (b, 0, p)),
                pl.BlockSpec((None, C, tp), lambda b, p: (b, 0, p)),
                pl.BlockSpec((None, HIDDEN, 1), lambda b, p: (b, 0, 0)),
                pl.BlockSpec((HIDDEN, C), lambda b, p: (0, 0)),
                pl.BlockSpec((HIDDEN, 1), lambda b, p: (0, 0)),
                pl.BlockSpec((C, HIDDEN), lambda b, p: (0, 0)),
                pl.BlockSpec((C, 1), lambda b, p: (0, 0)),
                pl.BlockSpec(memory_space=pltpu.MemorySpace.SMEM),
                pl.BlockSpec(memory_space=pltpu.MemorySpace.SMEM),
                pl.BlockSpec(memory_space=pltpu.MemorySpace.SMEM),
            ],
            out_specs=pl.BlockSpec((None, C, tp), lambda b, p: (b, 0, p)),
            compiler_params=pltpu.CompilerParams(
                dimension_semantics=("parallel", "parallel"),
                vmem_limit_bytes=_VMEM_LIMIT_BYTES),
        )(x2d, n2d, temb, self.w1t, self.b1t, self.w2t, self.b2t,
          sra_t, coef_t, spv_t)
        return out.reshape(x.shape)


# -----------------------------------------------------------------------------
# Pure-JAX reference (correctness check only)
# -----------------------------------------------------------------------------
def ref_net(params, x, t):
    w1, b1, w2, b2 = params
    B, C, H, W = x.shape
    x2d = jnp.transpose(x, (0, 2, 3, 1)).reshape(B, H * W, C)
    temb = time_embedding(t, HIDDEN).reshape(B, 1, HIDDEN)
    h = x2d @ w1 + b1 + temb
    h = h * jax.nn.sigmoid(h)
    o = h @ w2 + b2
    return jnp.transpose(o.reshape(B, H, W, C), (0, 3, 1, 2))


def _extract(a, t, shape):
    return a[t].reshape((shape[0],) + (1,) * (len(shape) - 1))


# -----------------------------------------------------------------------------
if __name__ == "__main__":
    key = jax.random.PRNGKey(0)
    k_x, k_w1, k_w2, k_noise, k_pnoise = jax.random.split(key, 5)

    B, C, H, W = 2, 4, 16, 16
    T = 8

    # deterministic synthetic net parameters
    w1 = jax.random.normal(k_w1, (C, HIDDEN), jnp.float32) * 0.1
    b1 = jnp.zeros((1, HIDDEN), jnp.float32)
    w2 = jax.random.normal(k_w2, (HIDDEN, C), jnp.float32) * 0.1
    b2 = jnp.zeros((1, C), jnp.float32)
    params = (w1, b1, w2, b2)

    betas = jnp.linspace(1e-4, 0.02, T, dtype=jnp.float32)
    model = DiffusionModel(params, betas, (C, H, W), T)

    x = jax.random.normal(k_x, (B, C, H, W), jnp.float32)
    noise = jax.random.normal(k_noise, (B, C, H, W), jnp.float32)
    pnoise = jax.random.normal(k_pnoise, (B, C, H, W), jnp.float32)
    t_index = 3
    t = jnp.full((B,), t_index, jnp.int32)

    # ---- run Pallas kernels ----
    eps = model.forward(x, t)
    x_noisy = model.q_sample(x, t, noise)
    x_prev = model.p_sample(x, t, t_index, pnoise)
    jax.block_until_ready((eps, x_noisy, x_prev))

    # ---- check against pure-JAX reference ----
    eps_ref = ref_net(params, x, t)
    q_ref = (_extract(model.sqrt_alphas_cumprod, t, x.shape) * x
             + _extract(model.sqrt_one_minus_alphas_cumprod, t, x.shape) * noise)
    mean_ref = (_extract(model.sqrt_recip_alphas, t, x.shape)
                * (x - _extract(model.betas, t, x.shape) * eps_ref
                   / _extract(model.sqrt_one_minus_alphas_cumprod, t, x.shape)))
    p_ref = mean_ref + jnp.sqrt(
        _extract(model.posterior_variance, t, x.shape)) * pnoise

    assert jnp.allclose(eps, eps_ref, rtol=1e-4, atol=1e-4)
    assert jnp.allclose(x_noisy, q_ref, rtol=1e-4, atol=1e-4)
    assert jnp.allclose(x_prev, p_ref, rtol=1e-4, atol=1e-4)

    print("KERNEL_OK")
</pallas_src>

<mosaic_0001>
module attributes {stable_mosaic.version = 11 : i64} {
  func.func @net_kernel(%arg0: i32, %arg1: i32, %arg2: memref<1x4x256xf32, #tpu.memory_space<vmem>>, %arg3: memref<1x32x1xf32, #tpu.memory_space<vmem>>, %arg4: memref<32x4xf32, #tpu.memory_space<vmem>>, %arg5: memref<32x1xf32, #tpu.memory_space<vmem>>, %arg6: memref<4x32xf32, #tpu.memory_space<vmem>>, %arg7: memref<4x1xf32, #tpu.memory_space<vmem>>, %arg8: memref<1x4x256xf32, #tpu.memory_space<vmem>>) attributes {dimension_semantics = [#tpu.dimension_semantics<parallel>, #tpu.dimension_semantics<parallel>], iteration_bounds = array<i64: 2, 1>, scalar_prefetch = 0 : i64, scratch_operands = 0 : i64, tpu.core_type = #tpu.core_type<tc>, window_params = [{transform_indices = @transform_0, window_bounds = array<i64: 1, 4, 256>}, {transform_indices = @transform_1, window_bounds = array<i64: 1, 32, 1>}, {pipeline_mode = #tpu.pipeline_mode<synchronous>, transform_indices = @transform_2, window_bounds = array<i64: 32, 4>}, {pipeline_mode = #tpu.pipeline_mode<synchronous>, transform_indices = @transform_3, window_bounds = array<i64: 32, 1>}, {pipeline_mode = #tpu.pipeline_mode<synchronous>, transform_indices = @transform_4, window_bounds = array<i64: 4, 32>}, {pipeline_mode = #tpu.pipeline_mode<synchronous>, transform_indices = @transform_5, window_bounds = array<i64: 4, 1>}, {transform_indices = @transform_6, window_bounds = array<i64: 1, 4, 256>}]} {
    %c0 = arith.constant 0 : index
    %c0_0 = arith.constant 0 : index
    %0 = vector.load %arg4[%c0, %c0_0] : memref<32x4xf32, #tpu.memory_space<vmem>>, vector<32x4xf32>
    %c0_1 = arith.constant 0 : index
    %c0_2 = arith.constant 0 : index
    %c0_3 = arith.constant 0 : index
    %1 = vector.load %arg2[%c0_1, %c0_2, %c0_3] : memref<1x4x256xf32, #tpu.memory_space<vmem>>, vector<1x4x256xf32>
    %2 = vector.shape_cast %1 : vector<1x4x256xf32> to vector<4x256xf32>
    %cst = arith.constant dense<0.000000e+00> : vector<32x256xf32>
    %3 = tpu.matmul %0, %2, %cst {dimension_numbers = #tpu.dot_dimension_numbers<[1], [0], [0], [1], [0, 0, 1, 1], [], []>} : vector<32x4xf32>, vector<4x256xf32>, vector<32x256xf32> -> vector<32x256xf32>
    %c0_4 = arith.constant 0 : index
    %c0_5 = arith.constant 0 : index
    %4 = vector.load %arg5[%c0_4, %c0_5] : memref<32x1xf32, #tpu.memory_space<vmem>>, vector<32x1xf32>
    %5 = vector.broadcast %4 : vector<32x1xf32> to vector<32x256xf32>
    %6 = arith.addf %3, %5 : vector<32x256xf32>
    %c0_6 = arith.constant 0 : index
    %c0_7 = arith.constant 0 : index
    %c0_8 = arith.constant 0 : index
    %7 = vector.load %arg3[%c0_6, %c0_7, %c0_8] : memref<1x32x1xf32, #tpu.memory_space<vmem>>, vector<1x32x1xf32>
    %8 = vector.shape_cast %7 : vector<1x32x1xf32> to vector<32x1xf32>
    %9 = vector.broadcast %8 : vector<32x1xf32> to vector<32x256xf32>
    %10 = arith.addf %6, %9 : vector<32x256xf32>
    %11 = arith.negf %10 : vector<32x256xf32>
    %12 = math.exp %11 : vector<32x256xf32>
    %cst_9 = arith.constant 1.000000e+00 : f32
    %13 = vector.broadcast %cst_9 : f32 to vector<32x256xf32>
    %14 = arith.addf %13, %12 : vector<32x256xf32>
    %15 = arith.divf %13, %14 : vector<32x256xf32>
    %16 = arith.mulf %10, %15 : vector<32x256xf32>
    %c0_10 = arith.constant 0 : index
    %c0_11 = arith.constant 0 : index
    %17 = vector.load %arg6[%c0_10, %c0_11] : memref<4x32xf32, #tpu.memory_space<vmem>>, vector<4x32xf32>
    %cst_12 = arith.constant dense<0.000000e+00> : vector<4x256xf32>
    %18 = tpu.matmul %17, %16, %cst_12 {dimension_numbers = #tpu.dot_dimension_numbers<[1], [0], [0], [1], [0, 0, 1, 1], [], []>} : vector<4x32xf32>, vector<32x256xf32>, vector<4x256xf32> -> vector<4x256xf32>
    %c0_13 = arith.constant 0 : index
    %c0_14 = arith.constant 0 : index
    %19 = vector.load %arg7[%c0_13, %c0_14] : memref<4x1xf32, #tpu.memory_space<vmem>>, vector<4x1xf32>
    %20 = vector.broadcast %19 : vector<4x1xf32> to vector<4x256xf32>
    %21 = arith.addf %18, %20 : vector<4x256xf32>
    %c0_15 = arith.constant 0 : index
    %c0_16 = arith.constant 0 : index
    %c0_17 = arith.constant 0 : index
    %22 = vector.load %arg8[%c0_15, %c0_16, %c0_17] : memref<1x4x256xf32, #tpu.memory_space<vmem>>, vector<1x4x256xf32>
    %23 = vector.shape_cast %22 : vector<1x4x256xf32> to vector<4x256xf32>
    %24 = vector.shape_cast %21 : vector<4x256xf32> to vector<1x4x256xf32>
    tpu.vector_store %arg8[%c0_15, %c0_16, %c0_17], %24 {strides = array<i32>} : memref<1x4x256xf32, #tpu.memory_space<vmem>>, vector<1x4x256xf32>,
    return
  }
  func.func @transform_0(%arg0: i32, %arg1: i32) -> (i32, i32, i32) {
    %c0_i32 = arith.constant 0 : i32
    %c0_i32_0 = arith.constant 0 : i32
    return %arg0, %c0_i32, %arg1 : i32, i32, i32
  }
  func.func @transform_1(%arg0: i32, %arg1: i32) -> (i32, i32, i32) {
    %c0_i32 = arith.constant 0 : i32
    %c0_i32_0 = arith.constant 0 : i32
    %c0_i32_1 = arith.constant 0 : i32
    return %arg0, %c0_i32, %c0_i32_0 : i32, i32, i32
  }
  func.func @transform_2(%arg0: i32, %arg1: i32) -> (i32, i32) {
    %c0_i32 = arith.constant 0 : i32
    %c0_i32_0 = arith.constant 0 : i32
    %c0_i32_1 = arith.constant 0 : i32
    return %c0_i32, %c0_i32_0 : i32, i32
  }
  func.func @transform_3(%arg0: i32, %arg1: i32) -> (i32, i32) {
    %c0_i32 = arith.constant 0 : i32
    %c0_i32_0 = arith.constant 0 : i32
    %c0_i32_1 = arith.constant 0 : i32
    return %c0_i32, %c0_i32_0 : i32, i32
  }
  func.func @transform_4(%arg0: i32, %arg1: i32) -> (i32, i32) {
    %c0_i32 = arith.constant 0 : i32
    %c0_i32_0 = arith.constant 0 : i32
    %c0_i32_1 = arith.constant 0 : i32
    return %c0_i32, %c0_i32_0 : i32, i32
  }
  func.func @transform_5(%arg0: i32, %arg1: i32) -> (i32, i32) {
    %c0_i32 = arith.constant 0 : i32
    %c0_i32_0 = arith.constant 0 : i32
    %c0_i32_1 = arith.constant 0 : i32
    return %c0_i32, %c0_i32_0 : i32, i32
  }
  func.func @transform_6(%arg0: i32, %arg1: i32) -> (i32, i32, i32) {
    %c0_i32 = arith.constant 0 : i32
    %c0_i32_0 = arith.constant 0 : i32
    return %arg0, %c0_i32, %arg1 : i32, i32, i32
  }
}

</mosaic_0001>

<bundles_post_ra>
// kernel: tpu_custom_call.1
= control target key start
LH: loop header
LB: loop body
LE: loop exit
PB: predicated region body
PF: predicated region fallthrough
CT: control target
= control target key end

     0   :  { %11 = vsyncpa [#allocation3], 0  ;;  %s1340_s0 = inlined_call_operand.vmem [shape: f32[2,4,256], index: 0, kind: input, shape index: {}]   ;;  %s1341_s1 = inlined_call_operand.vmem [shape: f32[2,32,1], index: 1, kind: input, shape index: {}]   ;;  %s1342_s2 = inlined_call_operand.vmem [shape: f32[32,4], index: 2, kind: input, shape index: {}]   ;;  %s1343_s3 = inlined_call_operand.vmem [shape: f32[32,1], index: 3, kind: input, shape index: {}]   ;;  %s1344_s4 = inlined_call_operand.vmem [shape: f32[4,32], index: 4, kind: input, shape index: {}]   ;;  %s1345_s5 = inlined_call_operand.vmem [shape: f32[4,1], index: 5, kind: input, shape index: {}]   ;;  %s1346_s6 = inlined_call_operand.hbm [shape: f32[2,4,256], index: 6, kind: output, shape index: {}]  }
   0x1   :  { %13 = vsyncpa [#allocation3 + $0x1], 0  ;;  %s1013_s21 = smov 0   ;;  %s1015_s22 = smov 0  }
   0x2   :  { %s1017_s23 = smov 0   ;;  %s1019_s24 = smov 0  }
   0x3   :  { %s1021_s25 = smov 0   ;;  %s1023_s26 = smov 0  }
   0x4 LB: > { %s766_s27 = sadd.s32 4294967295, %s975_s26   ;;  %s767_s28 = sadd.s32 4294967294, %s975_s26   ;;  %s975_s26 = sphi %s1023_s26, %s19_s26   ;;  %s971_s25 = sphi %s1021_s25, %s1371_s25   ;;  %s967_s24 = sphi %s1019_s24, %s1370_s24   ;;  %s963_s23 = sphi %s1017_s23, %s1369_s23   ;;  %s959_s22 = sphi %s1015_s22, %s1368_s22   ;;  %s955_s21 = sphi %s1013_s21, %s1367_s21  }
   0x5   : > { %s31_s29 = sadd.s32 1, %s971_s25  ;;  %s178_s30 = sadd.s32 1, %s963_s23 }
   0x6   : > { %p33_p0 = scmp.ge.s32.totalorder %s31_s29, 2  ;;  %p188_p1 = scmp.ne.s32.totalorder %s963_s23, %s959_s22 }
   0x7   : > { %p189_p2 = scmp.eq.s32.totalorder %s766_s27, 1  ;;  %p194_p3 = scmp.ne.s32.totalorder %s959_s22, %s955_s21 }
   0x8   : > { %s1373_s29 = smov (%p33_p0, %s31_s29), 0  ;;  %p195_p5 = scmp.eq.s32.totalorder %s767_s28, 1 }
   0x9   : > { %p1053_p4 = por %p189_p2, %p188_p1  ;;  %s173_s8 = ssub.s32 %s971_s25, %s1373_s29 }
   0xa   : > { %p770_p6 = scmp.ge.s32.totalorder %s975_s26, 1  ;;  %p176_p7 = scmp.eq.s32.totalorder %s173_s8, 0 }
   0xb   : > { %p1060_p8 = por %p195_p5, %p194_p3  ;;  %p246_p9 = scmp.lt.s32.totalorder %s975_s26, 3 }
   0xc   : > { %s1066_s10 = scalar_select %p176_p7, %s963_s23, %s178_s30  }
   0xd   : > { %p247_p10 = pnand %p770_p6, %p246_p9 }
   0xe   : > { %p286_p11 = scmp.lt.s32.totalorder (!%p247_p10), %s967_s24, 1  ;;  %s282_s12 = sand.u32 (!%p247_p10), 1, %s959_s22  }
   0xf   : > { %250 = sbr.rel (%p247_p10) target bundleno = 359 (0x167), region = 44  ;;  %s917_s11 = scalar_lea.hbm (!%p247_p10), %s1346_s6, 16 }
  0x14   : > { %v309_v0 = vld [vmem:[%s1343_s3 + $0x18] sm:$0xff]  ;;  %v977_v1 = vmov 0   ;;  %s287_s13 = scalar_select %p286_p11, %s967_s24, 1  ;;  %v308_v4 = vld [vmem:[%s1343_s3 + $0x10] sm:$0xff]  ;;  %vm1347_vm0 = vcmask 1043456   ;;  %v301_v6 = vld [vmem:[%s1342_s2] sm:$0xff] }
  0x15   : > { %863 = vset.pattern.permute.xlu1 %v977_v1  ;;  %862 = vset.pattern.permute.xlu0 %v977_v1  ;;  %vm334_vm1 = vcmask 31744   ;;  %v304_v7 = vld [vmem:[%s1342_s2 + $0x18] sm:$0xff]  ;;  %v307_v10 = vld [vmem:[%s1343_s3 + $0x8] sm:$0xff]  ;;  %v306_v12 = vld [vmem:[%s1343_s3] sm:$0xff] }
  0x16   : > { %327 = vperm.xlu0 %862, %v309_v0   ;;  %864 = vset.pattern.permute.xlu2 %v977_v1  ;;  %s802_s14 = sshll.u32 %s287_s13, 5  ;;  %s801_s15 = sshll.u32 %s287_s13, 3  ;;  %v302_v13 = vld [vmem:[%s1342_s2 + $0x8] sm:$0xff]  ;;  %v603_v15 = vld [vmem:[%s1345_s5] sm:$0xf]  ;;  %v303_v16 = vld [vmem:[%s1342_s2 + $0x10] sm:$0xff] }
  0x17   : > { %s1076_s18 = scalar_lea.vmem %s1341_s1, %s802_s14  ;;  %s293_s27 = scalar_lea.vmem %s1340_s0, %s801_s15 }
  0x18   : > { %v413_v2 = vld [vmem:[%s1076_s18 + $0x18] sm:$0xff]  ;;  %v305_v3 = vld [vmem:[%s293_s27] sm:$0xff]  ;;  %v412_v5 = vld [vmem:[%s1076_s18 + $0x10] sm:$0xff]  ;;  %s771_s13 = sshll.u32 %s282_s12, 3  ;;  %s803_s14 = sshll.u32 %s967_s24, 3 }
  0x19   : > { %431 = vperm.xlu1 %863, %v413_v2   ;;  %331 = vst [vmem:[#allocation1] ss:$2 sm:$0xff] %v305_v3  ;;  %426 = vperm.xlu2 %864, %v412_v5   ;;  %v411_v11 = vld [vmem:[%s1076_s18 + $0x8] sm:$0xff]  ;;  %v410_v14 = vld [vmem:[%s1076_s18] sm:$0xff]  ;;  %s673_s17 = scalar_lea.hbm %s1346_s6, %s803_s14  ;;  %s284_s19 = scalar_lea.vmem [#allocation2], %s771_s13 }
  0x1a   : > { %s675_s20 = sshll.u32 %s284_s19, 4  ;;  %s677_s27 = sshll.u32 %s673_s17, 4  ;;  %s676_s20 = int_to_ptr.vmem [resolvable:$true] %s675_s20  ;;  %s678_s27 = int_to_ptr.hbm [resolvable:$true] %s677_s27 }
  0x1b   : > { %s660_s24 = scalar_lea.sflag [#allocation3], %s282_s12  ;;  %s911_s28 = sshra.s32 %s678_s27, 4  ;;  %s912_s28 = int_to_ptr.hbm [resolvable:$true] %s911_s28 }
  0x1c   : > { %s913_s30 = scalar_lea.hbm %s912_s28, 8  ;;  %p918_p1 = scmp.lt.s32.totalorder %s912_s28, %s1346_s6 }
  0x1d   : > { %p914_p12 = scmp.ne.s32.totalorder %s912_s28, %s913_s30  ;;  %p919_p2 = scmp.lt.s32.totalorder %s917_s11, %s913_s30 }
  0x1e   : > { %322 = vperm.xlu0 %862, %v308_v4  }
  0x1f   : > { %p915_p13 = pnand %p914_p12, %p1053_p4  ;;  %p920_p3 = por %p919_p2, %p918_p1 }
  0x20   : > { %v332_v8 = vld.sshfl [vmem:[#allocation1] sm:$0xff pattern:$0x75316420]  ;;  %v333_v9 = vld.sshfl [vmem:[#allocation1 + $0x8] sm:$0xff pattern:$0x75316420] }
  0x21   : > { %776 = vmatpush.msk.msra.mxu0 %vm1347_vm0, %v332_v8  ;;  %804 = vmatpush.msk.msra.mxu2 %vm1347_vm0, %v332_v8  ;;  %p916_p0 = pneg %p915_p13 }
  0x22   : > { %781 = vmatpush.msk.msra.mxu1 %vm1347_vm0, %v333_v9  ;;  %805 = vmatpush.msk.msra.mxu3 %vm1347_vm0, %v333_v9 }
  0x23   : > { %777 = vmatmul.msk.f32.vlgmr.msra.gmra.mxu0 %vm334_vm1, %v301_v6  ;;  %780 = vmatmul.msk.f32.vlgmr.msra.gmra.mxu2 %vm334_vm1, %v304_v7  ;;  %p921_p5 = pnand %p920_p3, %p916_p0 }
  0x24   : > { %782 = vmatmul.msk.f32.vlgmr.msra.gmra.mxu1 %vm334_vm1, %v301_v6  ;;  %785 = vmatmul.msk.f32.vlgmr.msra.gmra.mxu3 %vm334_vm1, %v304_v7 }
  0x25   : > { %317 = vperm.xlu1 %863, %v307_v10   ;;  %312 = vperm.xlu2 %864, %v306_v12  }
  0x26   : > { %421 = vperm.xlu0 %862, %v411_v11  }
  0x2b   : > { %778 = vmatmul.msk.f32.gmra.mxu0 %vm334_vm1, %v302_v13 }
  0x2c   : > { %783 = vmatmul.msk.f32.gmra.mxu1 %vm334_vm1, %v302_v13 }
  0x2d   : > { %416 = vperm.xlu1 %863, %v410_v14   ;;  %606 = vperm.xlu2 %864, %v603_v15  }
  0x33   : > { %779 = vmatmul.msk.f32.gmra.mxu0 %vm334_vm1, %v303_v16 }
  0x34   : > { %784 = vmatmul.msk.f32.gmra.mxu1 %vm334_vm1, %v303_v16 }
  0x73   : > { %v427_v18 = vpop.permute.xlu2 %426 }
  0x7f   : > { %v313_v21 = vpop.permute.xlu2 %312 }
  0x88   : > { %v328_v19 = vpop.permute.xlu0 %327 }
  0x8b   : > { %v432_v17 = vpop.permute.xlu1 %431 }
  0x90   : > { %v323_v22 = vpop.permute.xlu0 %322 }
  0x97   : > { %v318_v20 = vpop.permute.xlu1 %317 }
  0x98   : > { %v422_v40 = vpop.permute.xlu0 %421 }
  0x9f   : > { %v417_v24 = vpop.permute.xlu1 %416 }
  0xa0   : > { %v369_v23 = vpop.f32.mrf.mxu0 }
  0xa1   : > { %v370_v25 = vadd.f32 %v369_v23, %v313_v21  ;;  %v398_v26 = vpop.f32.mrf.mxu1 }
  0xa2   : > { %v399_v27 = vadd.f32 %v398_v26, %v313_v21 }
  0xa3   : > { %v1121_v28 = vadd.f32 %v417_v24, %v370_v25 }
  0xa4   : > { %v1123_v29 = vadd.f32 %v417_v24, %v399_v27 }
  0xa5   : > { %v786_v30 = vmul.f32 -1.442695, %v1121_v28 }
  0xa6   : > { %v787_v31 = vmul.f32 -1.442695, %v1123_v29  ;;  %v378_v32 = vpop.f32.mrf.mxu2 }
  0xa7   : > { %865 = vpow2.f32 %v786_v30  ;;  %v379_v33 = vadd.f32 %v378_v32, %v328_v19  ;;  %v407_v34 = vpop.f32.mrf.mxu3 }
  0xa8   : > { %867 = vpow2.f32 %v787_v31  ;;  %v408_v35 = vadd.f32 %v407_v34, %v328_v19  ;;  %v372_v36 = vpop.f32.mrf.mxu0 }
  0xa9   : > { %v1127_v37 = vadd.f32 %v432_v17, %v379_v33  ;;  %v373_v38 = vadd.f32 %v372_v36, %v318_v20  ;;  %v401_v39 = vpop.f32.mrf.mxu1 }
  0xaa   : > { %v1129_v41 = vadd.f32 %v432_v17, %v408_v35  ;;  %v402_v42 = vadd.f32 %v401_v39, %v318_v20 }
  0xab   : > { %v792_v43 = vmul.f32 -1.442695, %v1127_v37  ;;  %v1132_v44 = vadd.f32 %v422_v40, %v373_v38 }
  0xac   : > { %v793_v45 = vmul.f32 -1.442695, %v1129_v41  ;;  %v1135_v46 = vadd.f32 %v422_v40, %v402_v42 }
  0xad   : > { %v866_v47 = vpop.eup %865  ;;  %869 = vpow2.f32 %v792_v43  ;;  %v788_v48 = vmul.f32 -1.442695, %v1132_v44 }
  0xae   : > { %v868_v49 = vpop.eup %867  ;;  %871 = vpow2.f32 %v793_v45  ;;  %v789_v50 = vmul.f32 -1.442695, %v1135_v46  ;;  %v1139_v51 = vadd.f32 1.0, %v866_v47 }
  0xaf   : > { %873 = vpow2.f32 %v788_v48  ;;  %v1141_v53 = vadd.f32 1.0, %v868_v49 }
  0xb0   : > { %v375_v52 = vpop.f32.mrf.mxu0  ;;  %875 = vpow2.f32 %v789_v50  ;;  %v485_v5 = vand.u32 2147483648, %v1139_v51  ;;  %v483_v12 = vand.u32 2147483647, %v1139_v51  ;;  %vm479_vm7 = vweird.f32 %v1139_v51 }
  0xb1   : > { %v376_v54 = vadd.f32 %v375_v52, %v323_v22  ;;  %v404_v55 = vpop.f32.mrf.mxu1  ;;  %877 = vrcp.f32 %v1139_v51  ;;  %v498_v14 = vand.u32 2147483647, %v1141_v53  ;;  %vm494_vm12 = vweird.f32 %v1141_v53 }
  0xb2   : > { %v405_v56 = vadd.f32 %v404_v55, %v323_v22  ;;  %879 = vrcp.f32 %v1141_v53  ;;  %v1163_v13 = vor.u32 1.1754944e-38, %v485_v5 }
  0xb3   : > { %v870_v57 = vpop.eup %869  ;;  %v1143_v58 = vadd.f32 %v427_v18, %v376_v54 }
  0xb4   : > { %v872_v59 = vpop.eup %871  ;;  %v472_v60 = vadd.f32 1.0, %v870_v57  ;;  %v1146_v61 = vadd.f32 %v427_v18, %v405_v56  ;;  %v500_v18 = vand.u32 2147483648, %v1141_v53 }
  0xb5   : > { %v874_v62 = vpop.eup %873  ;;  %v473_v63 = vadd.f32 1.0, %v872_v59  ;;  %v790_v0 = vmul.f32 -1.442695, %v1143_v58 }
  0xb6   : > { %881 = vrcp.f32 %v472_v60  ;;  %v1150_v1 = vadd.f32 1.0, %v874_v62  ;;  %v791_v2 = vmul.f32 -1.442695, %v1146_v61  ;;  %v876_v3 = vpop.eup %875  ;;  %v573_v9 = vand.u32 2147483647, %v472_v60 }
  0xb7   : > { %883 = vrcp.f32 %v473_v63  ;;  %v1154_v4 = vadd.f32 1.0, %v876_v3  ;;  %v1157_v6 = vpop.eup %877  ;;  %vm569_vm2 = vweird.f32 %v472_v60  ;;  %v575_v16 = vand.u32 2147483648, %v472_v60 }
  0xb8   : > { %885 = vrcp.f32 %v1150_v1  ;;  %v1159_v7 = vpop.eup %879  ;;  %vm584_vm3 = vweird.f32 %v473_v63  ;;  %v588_v21 = vand.u32 2147483647, %v473_v63  ;;  %vm1173_vm4 = vcmp.eq.f32.partialorder %v573_v9, 8.507059e+37 }
  0xb9   : > { %887 = vpow2.f32 %v790_v0  ;;  %v590_v27 = vand.u32 2147483648, %v473_v63  ;;  %v475_v32 = vmul.f32 %v1157_v6, %v1139_v51  ;;  %v490_v35 = vmul.f32 %v1159_v7, %v1141_v53 }
  0xba   : > { %889 = vpow2.f32 %v791_v2  ;;  %v576_v38 = vor.u32 1.1754944e-38, %v575_v16  ;;  %vm589_vm9 = vcmp.eq.f32.partialorder %v588_v21, 8.507059e+37  ;;  %vm509_vm10 = vweird.f32 %v1150_v1 }
  0xbb   : > { %891 = vrcp.f32 %v1154_v4  ;;  %v591_v42 = vor.u32 1.1754944e-38, %v590_v27  ;;  %v513_v43 = vand.u32 2147483647, %v1150_v1  ;;  %v515_v47 = vand.u32 2147483648, %v1150_v1 }
  0xbc   : > { %v882_v8 = vpop.eup %881  ;;  %v476_v49 = vsub.f32 1.0, %v475_v32  ;;  %v528_v54 = vand.u32 2147483647, %v1154_v4  ;;  %v491_v55 = vsub.f32 1.0, %v490_v35  ;;  %vm524_vm13 = vweird.f32 %v1154_v4 }
  0xbd   : > { %v884_v10 = vpop.eup %883  ;;  %v565_v11 = vmul.f32 %v882_v8, %v472_v60  ;;  %vm570_vm5 = vweird.f32 %v882_v8  ;;  %v530_v0 = vand.u32 2147483648, %v1154_v4  ;;  %vm480_vm14 = vweird.f32 %v1157_v6 }
  0xbe   : > { %v1166_v15 = vpop.eup %885  ;;  %v580_v17 = vmul.f32 %v884_v10, %v473_v63  ;;  %vm585_vm6 = vweird.f32 %v884_v10  ;;  %vm571_vm8 = vmor %vm569_vm2, %vm570_vm5  ;;  %vm1206_vm15 = vcmp.eq.f32.partialorder %v513_v43, 8.507059e+37  ;;  %v477_v9 = vmul.f32 %v1157_v6, %v476_v49 }
  0xbf   : > { %v888_v19 = vpop.eup %887  ;;  %v566_v20 = vsub.f32 1.0, %v565_v11  ;;  %v505_v22 = vmul.f32 %v1166_v15, %v1150_v1  ;;  %vm586_vm11 = vmor %vm584_vm3, %vm585_vm6  ;;  %vm510_vm1 = vweird.f32 %v1166_v15  ;;  %vm1214_vm2 = vcmp.eq.f32.partialorder %v528_v54, 8.507059e+37 }
  0xc0   : > { %v890_v23 = vpop.eup %889  ;;  %v1171_v24 = vadd.f32 1.0, %v888_v19  ;;  %v581_v26 = vsub.f32 1.0, %v580_v17  ;;  %v492_v11 = vmul.f32 %v1159_v7, %v491_v55  ;;  %vm495_vm3 = vweird.f32 %v1159_v7  ;;  %vm1236_vm6 = vmor %vm479_vm7, %vm480_vm14 }
  0xc1   : > { %v1177_v30 = vadd.f32 1.0, %v890_v23  ;;  %v567_v31 = vmul.f32 %v882_v8, %v566_v20  ;;  %v1181_v33 = vpop.eup %891  ;;  %v506_v39 = vsub.f32 1.0, %v505_v22  ;;  %v478_v32 = vadd.f32 %v1157_v6, %v477_v9  ;;  %vm1255_vm7 = vmor %vm494_vm12, %vm495_vm3 }
  0xc2   : > { %893 = vrcp.f32 %v1171_v24  ;;  %v582_v34 = vmul.f32 %v884_v10, %v581_v26  ;;  %v520_v48 = vmul.f32 %v1181_v33, %v1154_v4  ;;  %v543_v17 = vand.u32 2147483647, %v1171_v24 }
  0xc3   : > { %895 = vrcp.f32 %v1177_v30  ;;  %v568_v36 = vadd.f32 %v882_v8, %v567_v31  ;;  %v507_v59 = vmul.f32 %v1166_v15, %v506_v39  ;;  %v545_v19 = vand.u32 2147483648, %v1171_v24 }
  0xc4   : > { %v583_v40 = vadd.f32 %v884_v10, %v582_v34  ;;  %v521_v60 = vsub.f32 1.0, %v520_v48  ;;  %v558_v23 = vand.u32 2147483647, %v1177_v30  ;;  %vm525_vm5 = vweird.f32 %v1181_v33 }
  0xc5   : > { %v572_v45 = vsel %vm571_vm8, %v882_v8, %v568_v36  ;;  %v508_v20 = vadd.f32 %v1166_v15, %v507_v59  ;;  %v531_v51 = vor.u32 1.1754944e-38, %v530_v0  ;;  %v493_v35 = vadd.f32 %v1159_v7, %v492_v11 }
  0xc6   : > { %v577_v50 = vsel %vm1173_vm4, %v576_v38, %v572_v45  ;;  %v587_v52 = vsel %vm586_vm11, %v884_v10, %v583_v40  ;;  %v522_v8 = vmul.f32 %v1181_v33, %v521_v60  ;;  %vm1225_vm4 = vcmp.eq.f32.partialorder %v483_v12, 8.507059e+37 }
  0xc7   : > { %v600_v56 = vmul.f32 %v577_v50, %v1127_v37  ;;  %v592_v57 = vsel %vm589_vm9, %v591_v42, %v587_v52  ;;  %v516_v37 = vor.u32 1.1754944e-38, %v515_v47  ;;  %v560_v12 = vand.u32 2147483648, %v1177_v30  ;;  %vm1245_vm9 = vmor %vm509_vm10, %vm510_vm1 }
  0xc8   : > { %v894_v62 = vpop.eup %893  ;;  %v601_v63 = vmul.f32 %v592_v57, %v1129_v41  ;;  %v523_v25 = vadd.f32 %v1181_v33, %v522_v8  ;;  %vm539_vm10 = vweird.f32 %v1171_v24  ;;  %vm554_vm14 = vweird.f32 %v1177_v30  ;;  %vm1268_vm1 = vmor %vm524_vm13, %vm525_vm5 }
  0xc9   : > { %v896_v2 = vpop.eup %895  ;;  %625 = vmatpush.msrb.mxu2 %v600_v56  ;;  %v535_v3 = vmul.f32 %v894_v62, %v1171_v24  ;;  %vm540_vm8 = vweird.f32 %v894_v62  ;;  %v512_v38 = vsel %vm1245_vm9, %v1166_v15, %v508_v20  ;;  %vm544_vm3 = vcmp.eq.f32.partialorder %v543_v17, 8.507059e+37 }
  0xca   : > { %645 = vmatpush.msrb.mxu3 %v601_v63  ;;  %v550_v41 = vmul.f32 %v896_v2, %v1177_v30  ;;  %vm555_vm11 = vweird.f32 %v896_v2  ;;  %vm541_vm12 = vmor %vm539_vm10, %vm540_vm8  ;;  %v546_v40 = vor.u32 1.1754944e-38, %v545_v19  ;;  %v527_v24 = vsel %vm1268_vm1, %v1181_v33, %v523_v25 }
  0xcb   : > { %v536_v16 = vsub.f32 1.0, %v535_v3  ;;  %vm556_vm0 = vmor %vm554_vm14, %vm555_vm11  ;;  %vm559_vm9 = vcmp.eq.f32.partialorder %v558_v23, 8.507059e+37  ;;  %v561_v15 = vor.u32 1.1754944e-38, %v560_v12  ;;  %v482_v4 = vsel %vm1236_vm6, %v1157_v6, %v478_v32 }
  0xcc   : > { %v551_v22 = vsub.f32 1.0, %v550_v41  ;;  %v517_v47 = vsel %vm1206_vm15, %v516_v37, %v512_v38  ;;  %v497_v48 = vsel %vm1255_vm7, %v1159_v7, %v493_v35  ;;  %v532_v50 = vsel %vm1214_vm2, %v531_v51, %v527_v24 }
  0xcd   : > { %v537_v27 = vmul.f32 %v894_v62, %v536_v16  ;;  %v501_v52 = vor.u32 1.1754944e-38, %v500_v18  ;;  %v487_v54 = vsel %vm1225_vm4, %v1163_v13, %v482_v4  ;;  %v597_v55 = vmul.f32 %v532_v50, %v1135_v46 }
  0xce   : > { %v552_v34 = vmul.f32 %v896_v2, %v551_v22  ;;  %v594_v18 = vmul.f32 %v487_v54, %v1121_v28  ;;  %vm609_vm13 = vcmask 261120   ;;  %v607_v28 = vpop.permute.xlu2 %606  ;;  %vm1366_vm15 = vcmask 1043456  }
  0xcf   : > { %v538_v1 = vadd.f32 %v894_v62, %v537_v27 }
  0xd0   : > { %v553_v42 = vadd.f32 %v896_v2, %v552_v34 }
  0xd1   : > { %v542_v30 = vsel %vm541_vm12, %v894_v62, %v538_v1 }
  0xd2   : > { %v547_v43 = vsel %vm544_vm3, %v546_v40, %v542_v30  ;;  %v557_v45 = vsel %vm556_vm0, %v896_v2, %v553_v42  ;;  %vm499_vm0 = vcmp.eq.f32.partialorder %v498_v14, 8.507059e+37 }
  0xd3   : > { %v598_v33 = vmul.f32 %v547_v43, %v1143_v58  ;;  %v562_v49 = vsel %vm559_vm9, %v561_v15, %v557_v45  ;;  %v596_v58 = vmul.f32 %v517_v47, %v1132_v44  ;;  %v502_v7 = vsel %vm499_vm0, %v501_v52, %v497_v48 }
  0xd4   : > { %v599_v6 = vmul.f32 %v562_v49, %v1146_v61  ;;  %v602_v61 = vld [vmem:[%s1344_s4] sm:$0xf]  ;;  %v595_v53 = vmul.f32 %v502_v7, %v1123_v29 }
  0xd5   : > { %626 = vmatpush.msrb.mxu2 %v598_v33 }
  0xd6   : > { %646 = vmatpush.msrb.mxu3 %v599_v6 }
  0xd7   : > { %627 = vmatpush.msrb.mxu2 %v596_v58 }
  0xd8   : > { %647 = vmatpush.msrb.mxu3 %v597_v55 }
  0xd9   : > { %628 = vmatpush.msrb.mxu2 %v594_v18 }
  0xda   : > { %648 = vmatpush.msrb.mxu3 %v595_v53  ;;  %794 = vmatmul.msk.f32.vlgmr.msrb.gmra.mxu2 %vm609_vm13, %v602_v61 }
  0xdb   : > { %795 = vmatmul.msk.f32.vlgmr.msrb.gmra.mxu3 %vm609_vm13, %v602_v61 }
 0x15d   : > { %v630_v44 = vpop.f32.mrf.mxu2 }
 0x15e   : > { %v650_v46 = vpop.f32.mrf.mxu3  ;;  %v631_v29 = vadd.f32 %v630_v44, %v607_v28 }
 0x15f   : > { %v651_v13 = vadd.f32 %v650_v46, %v607_v28 }
 0x161   : > { %v655_v14 = vrot.slane %v651_v13, 4 }
 0x163   : > { %v656_v56 = vsel %vm1366_vm15, %v631_v29, %v655_v14 }
 0x164   : > { %658 = vst [vmem:[%s284_s19] sm:$0xff] %v656_v56 }
 0x165   : > { %924 = shalt.err (!%p921_p5)
}
 0x166   : > { %806 = dma.vmem_to_hbm [thread:$0]  (%p1053_p4), %s676_s20, 128, %s678_s27, %s660_s24  }
 0x167 PF: > { %p812_p6 = scmp.ge.s32.totalorder %s975_s26, 2  ;;  %s689_s12 = sand.u32 1, %s955_s21  }
 0x168   : > { %s690_s15 = scalar_lea.sflag [#allocation3], %s689_s12 }
 0x169   : > { %p809_p7 = pnand %p812_p6, %p1060_p8 }
 0x16b   : > { %p810_p9 = pneg %p809_p7 }
 0x16d   : > { %950 = dma.done.wait (%p810_p9), %s690_s15, 128  }
 0x16e   : > { %952 = vsyncadd (%p810_p9), %s690_s15, 4294967168  ;;  %s19_s26 = sadd.s32 1, %s975_s26   ;;  %s1367_s21 = smov %s959_s22 }
 0x16f   : > { %p16_p10 = scmp.ge.s32.totalorder %s19_s26, 4   ;;  %s1368_s22 = smov %s963_s23 }
 0x170   : > { %s1369_s23 = smov %s1066_s10  ;;  %s1370_s24 = smov %s971_s25 }
 0x171   : > { %s1371_s25 = smov %s1373_s29  ;;  %18 = sbr.rel (!%p16_p10) target bundleno = 4 (0x4), region = 82 }
 0x176   :  { %696 = vsyncpa [#allocation3], 1 }
 0x177   :  { %698 = vsyncpa [#allocation3 + $0x1], 1 }

</bundles_post_ra>
